<compile_context>
chip_gen: v5e
topology: v5e:2x2
jax: 0.10.0
libtpu: 0.0.40
codegen_flags: <defaults>
</compile_context>

<pallas_src>
import jax
import jax.numpy as jnp
from jax.experimental import pallas as pl
from jax.experimental.pallas import tpu as pltpu

M = 10            # matrix dim of the weight / bias parameters
F = M * M         # 100 flattened features per batch element

TB_MAX = 4096     # rows per block: 4096*100*4B ~= 1.6 MiB streamed per buffer
SMALL_BC = 256    # below this, a single block (overhead-dominated anyway)


def _kron_matmul_bias_kernel(wk_ref, b_ref, x_ref, o_ref):
    # wk_ref: (100, 100) resident Kronecker weight (W^T ⊗ I_10)
    # b_ref : (1, 100)   resident bias row
    # x_ref : (TB, 100)  streamed batch rows (natural layout)
    # o_ref : (TB, 100)
    acc = jnp.dot(x_ref[...], wk_ref[...], preferred_element_type=jnp.float32)
    o_ref[...] = (acc + b_ref[...]).astype(o_ref.dtype)


def _round_up(a, m):
    return ((a + m - 1) // m) * m


def model_forward(x, weight, bias):
    """x: (..., 10, 10); weight, bias: (1, 1, 10, 10). Matches torch broadcasting."""
    assert x.shape[-2:] == (M, M)
    batch_shape = x.shape[:-2]
    out_batch = jnp.broadcast_shapes(batch_shape, weight.shape[:-2])
    bc = 1
    for d in batch_shape:
        bc *= d

    w2d = weight.reshape(M, M).astype(jnp.float32)
    # y_flat[b, i*M+j] = sum_k W[i,k] * x_flat[b, k*M+j]
    #   <=>  y_flat = x_flat @ A,  A[k*M+j, i*M+j'] = W[i,k]*delta_{jj'} = (W^T ⊗ I_M)
    wk = jnp.kron(w2d.T, jnp.eye(M, dtype=jnp.float32))      # (100, 100), built once
    b_row = bias.reshape(1, F).astype(jnp.float32)            # (1, 100)

    x_flat = x.reshape(bc, F)   # free reshape: natural contiguous layout, no transpose

    # ---- row tiling ---------------------------------------------------------
    if bc <= SMALL_BC:
        tb, n_blocks, bc_pad = bc, 1, bc                      # single block
    else:
        # even number of >= TB_MAX-ish blocks so both v7x TensorCores get work
        n_blocks = max(2, 2 * pl.cdiv(bc, 2 * TB_MAX))
        tb = _round_up(pl.cdiv(bc, n_blocks), 8)              # (8,128)-legal sublane tile
        bc_pad = n_blocks * tb
        if bc_pad != bc:
            # Rare path (large, non-8*n_blocks-aligned batch): one extra copy of x.
            x_flat = jnp.pad(x_flat, ((0, bc_pad - bc), (0, 0)))

    cost = pl.CostEstimate(
        flops=2 * bc_pad * F * F,
        transcendentals=0,
        bytes_accessed=4 * (2 * bc_pad * F + F * F + F),
    )

    y_flat = pl.pallas_call(
        _kron_matmul_bias_kernel,
        out_shape=jax.ShapeDtypeStruct((bc_pad, F), x.dtype),
        grid=(n_blocks,),
        in_specs=[
            pl.BlockSpec((F, F), lambda i: (0, 0)),     # Kron weight: resident
            pl.BlockSpec((1, F), lambda i: (0, 0)),     # bias row:   resident
            pl.BlockSpec((tb, F), lambda i: (i, 0)),    # x rows:     streamed
        ],
        out_specs=pl.BlockSpec((tb, F), lambda i: (i, 0)),
        compiler_params=pltpu.CompilerParams(
            dimension_semantics=("parallel",)),
        cost_estimate=cost,
    )(wk, b_row, x_flat)

    if bc_pad != bc:
        y_flat = y_flat[:bc]
    y = y_flat.reshape(*batch_shape, M, M)
    # torch.matmul broadcasts weight's (1, 1) batch dims into the result.
    return jnp.broadcast_to(y, (*out_batch, M, M))


if __name__ == "__main__":
    key = jax.random.PRNGKey(0)
    k_w, k_b, k_x1, k_x2 = jax.random.split(key, 4)

    # Deterministic "randn"-style parameters (module __init__ shapes).
    weight = jax.random.normal(k_w, (1, 1, M, M), dtype=jnp.float32)
    bias = jax.random.normal(k_b, (1, 1, M, M), dtype=jnp.float32)

    # Small batched input consistent with torch.matmul broadcasting.
    x_small = jax.random.normal(k_x1, (4, 3, M, M), dtype=jnp.float32)
    # Moderately larger flat batch that exercises the multi-block grid path.
    x_big = jax.random.normal(k_x2, (1024, M, M), dtype=jnp.float32)

    for x in (x_small, x_big):
        y = jax.block_until_ready(model_forward(x, weight, bias))
        ref = jnp.matmul(weight, x) + bias
        assert y.shape == ref.shape, (y.shape, ref.shape)
        max_err = float(jnp.max(jnp.abs(y - ref)))
        assert jnp.allclose(y, ref, atol=1e-3, rtol=1e-3), max_err

    print("KERNEL_OK")
</pallas_src>

<mosaic_0001>
module attributes {stable_mosaic.version = 11 : i64} {
  func.func @_kron_matmul_bias_kernel(%arg0: i32, %arg1: memref<100x100xf32, #tpu.memory_space<vmem>>, %arg2: memref<1x100xf32, #tpu.memory_space<vmem>>, %arg3: memref<12x100xf32, #tpu.memory_space<vmem>>, %arg4: memref<12x100xf32, #tpu.memory_space<vmem>>) attributes {dimension_semantics = [#tpu.dimension_semantics<parallel>], iteration_bounds = array<i64: 1>, scalar_prefetch = 0 : i64, scratch_operands = 0 : i64, tpu.core_type = #tpu.core_type<tc>, window_params = [{pipeline_mode = #tpu.pipeline_mode<synchronous>, transform_indices = @transform_0, window_bounds = array<i64: 100, 100>}, {pipeline_mode = #tpu.pipeline_mode<synchronous>, transform_indices = @transform_1, window_bounds = array<i64: 1, 100>}, {transform_indices = @transform_2, window_bounds = array<i64: 12, 100>}, {transform_indices = @transform_3, window_bounds = array<i64: 12, 100>}]} {
    %c0 = arith.constant 0 : index
    %c0_0 = arith.constant 0 : index
    %0 = vector.load %arg3[%c0, %c0_0] : memref<12x100xf32, #tpu.memory_space<vmem>>, vector<12x100xf32>
    %c0_1 = arith.constant 0 : index
    %c0_2 = arith.constant 0 : index
    %1 = vector.load %arg1[%c0_1, %c0_2] : memref<100x100xf32, #tpu.memory_space<vmem>>, vector<100x100xf32>
    %cst = arith.constant dense<0.000000e+00> : vector<12x100xf32>
    %2 = tpu.matmul %0, %1, %cst {dimension_numbers = #tpu.dot_dimension_numbers<[1], [0], [0], [1], [0, 0, 1, 1], [], []>} : vector<12x100xf32>, vector<100x100xf32>, vector<12x100xf32> -> vector<12x100xf32>
    %c0_3 = arith.constant 0 : index
    %c0_4 = arith.constant 0 : index
    %3 = vector.load %arg2[%c0_3, %c0_4] : memref<1x100xf32, #tpu.memory_space<vmem>>, vector<1x100xf32>
    %4 = vector.broadcast %3 : vector<1x100xf32> to vector<12x100xf32>
    %5 = arith.addf %2, %4 : vector<12x100xf32>
    %c0_5 = arith.constant 0 : index
    %c0_6 = arith.constant 0 : index
    %6 = vector.load %arg4[%c0_5, %c0_6] : memref<12x100xf32, #tpu.memory_space<vmem>>, vector<12x100xf32>
    tpu.vector_store %arg4[%c0_5, %c0_6], %5 {strides = array<i32>} : memref<12x100xf32, #tpu.memory_space<vmem>>, vector<12x100xf32>,
    return
  }
  func.func @transform_0(%arg0: i32) -> (i32, i32) {
    %c0_i32 = arith.constant 0 : i32
    %c0_i32_0 = arith.constant 0 : i32
    %c0_i32_1 = arith.constant 0 : i32
    return %c0_i32, %c0_i32_0 : i32, i32
  }
  func.func @transform_1(%arg0: i32) -> (i32, i32) {
    %c0_i32 = arith.constant 0 : i32
    %c0_i32_0 = arith.constant 0 : i32
    %c0_i32_1 = arith.constant 0 : i32
    return %c0_i32, %c0_i32_0 : i32, i32
  }
  func.func @transform_2(%arg0: i32) -> (i32, i32) {
    %c0_i32 = arith.constant 0 : i32
    %c0_i32_0 = arith.constant 0 : i32
    return %arg0, %c0_i32 : i32, i32
  }
  func.func @transform_3(%arg0: i32) -> (i32, i32) {
    %c0_i32 = arith.constant 0 : i32
    %c0_i32_0 = arith.constant 0 : i32
    return %arg0, %c0_i32 : i32, i32
  }
}

</mosaic_0001>

<bundles_post_ra>
// kernel: tpu_custom_call.1
= control target key start
LH: loop header
LB: loop body
LE: loop exit
PB: predicated region body
PF: predicated region fallthrough
CT: control target
= control target key end

     0   :  { %8 = vsyncpa [#allocation3], 0  ;;  %s311_s0 = inlined_call_operand.hbm [shape: f32[100,100], index: 0, kind: input, shape index: {}]   ;;  %s312_s1 = inlined_call_operand.hbm [shape: f32[1,100], index: 1, kind: input, shape index: {}]   ;;  %s313_s2 = inlined_call_operand.hbm [shape: f32[12,100], index: 2, kind: input, shape index: {}]   ;;  %s314_s3 = inlined_call_operand.hbm [shape: f32[12,100], index: 3, kind: output, shape index: {}]  }
   0x1   :  { %9 = vsyncpa [#allocation6], 0  ;;  %s29_s14 = sshll.u32 %s312_s1, 4  ;;  %s30_s14 = int_to_ptr.hbm [resolvable:$true] %s29_s14 }
   0x2   :  { %10 = vsyncpa [#allocation4], 0  ;;  %s261_s15 = smov [#allocation5]   ;;  %s15_s19 = sshll.u32 %s311_s0, 4  ;;  %s16_s19 = int_to_ptr.hbm [resolvable:$true] %s15_s19 }
   0x3   :  { %s31_s16 = sshll.u32 %s261_s15, 4  ;;  %s262_s20 = smov [#allocation2]   ;;  %s32_s16 = int_to_ptr.vmem [resolvable:$true] %s31_s16 }
   0x4   :  { %34 = dma.hbm_to_vmem [thread:$0]  %s30_s14, 16, %s32_s16, [#allocation6]  }
   0x5   :  { %s17_s21 = sshll.u32 %s262_s20, 4  ;;  %s263_s22 = smov 128   ;;  %s18_s21 = int_to_ptr.vmem [resolvable:$true] %s17_s21 }
   0x6   :  { %s264_s23 = smov 8   ;;  %s39_s25 = sshll.u32 %s313_s2, 4  ;;  %s40_s25 = int_to_ptr.hbm [resolvable:$true] %s39_s25 }
   0x7   :  { %23 = dma.hbm_to_vmem [thread:$0]  %s16_s19, 1664, %s18_s21, [#allocation3], %s263_s22, %s263_s22, %s264_s23  }
   0x8   :  { %s265_s26 = smov [#allocation7]  }
   0x9   :  { %s41_s27 = sshll.u32 %s265_s26, 4  ;;  %s42_s27 = int_to_ptr.vmem [resolvable:$true] %s41_s27 }
   0xa   :  { %47 = dma.hbm_to_vmem [thread:$0]  %s40_s25, 256, %s42_s27, [#allocation6], %s263_s22, %s263_s22, %s264_s23  }
   0xb   :  { %255 = dma.done.wait [#allocation3], 1664  }
   0xc   :  { %256 = vsyncadd [#allocation3], 4294965632 }
   0xd   :  { %257 = dma.done.wait [#allocation6], 272  }
   0xe   :  { %258 = vsyncadd [#allocation6], 4294967024  ;;  %vm86_vm0 = vcmask 1043456   ;;  %v74_v0 = vld [vmem:[#allocation2 + $0x60] sm:$0xf]  ;;  %v73_v1 = vld [vmem:[#allocation2 + $0x58] sm:$0xff] }
   0xf   :  { %136 = vmatpush.msk.msra.mxu0 %vm86_vm0, %v74_v0  ;;  %139 = vmatpush.msk.msra.mxu1 %vm86_vm0, %v74_v0  ;;  %v72_v2 = vld [vmem:[#allocation2 + $0x50] sm:$0xff]  ;;  %v71_v3 = vld [vmem:[#allocation2 + $0x48] sm:$0xff]  ;;  %v70_v4 = vld [vmem:[#allocation2 + $0x40] sm:$0xff]  ;;  %vm79_vm1 = vcmask 818176   ;;  %s266_s0 = smov [#allocation8]   ;;  %s122_s30 = sshll.u32 %s314_s3, 4  ;;  %s123_s30 = int_to_ptr.hbm [resolvable:$true] %s122_s30 }
  0x10   :  { %v69_v5 = vld [vmem:[#allocation2 + $0x38] sm:$0xff]  ;;  %v68_v6 = vld [vmem:[#allocation2 + $0x30] sm:$0xff]  ;;  %v67_v7 = vld [vmem:[#allocation2 + $0x28] sm:$0xff]  ;;  %s120_s2 = sshll.u32 %s266_s0, 4  ;;  %vm114_vm2 = vcmask 814080   ;;  %s121_s2 = int_to_ptr.vmem [resolvable:$true] %s120_s2 }
  0x11   :  { %94 = vmatpush.msra.mxu0 %v73_v1  ;;  %140 = vmatpush.msra.mxu1 %v73_v1  ;;  %v66_v8 = vld [vmem:[#allocation2 + $0x20] sm:$0xff]  ;;  %v65_v9 = vld [vmem:[#allocation2 + $0x18] sm:$0xff]  ;;  %v64_v10 = vld [vmem:[#allocation2 + $0x10] sm:$0xff] }
  0x12   :  { %v63_v11 = vld [vmem:[#allocation2 + $0x8] sm:$0xff]  ;;  %v62_v12 = vld [vmem:[#allocation2] sm:$0xff]  ;;  %v61_v14 = vld [vmem:[#allocation7 + $0x8] sm:$0xf] }
  0x13   :  { %95 = vmatpush.msra.mxu0 %v72_v2  ;;  %141 = vmatpush.msra.mxu1 %v72_v2  ;;  %v60_v13 = vld [vmem:[#allocation7] sm:$0xff]  ;;  %v158_v15 = vld [vmem:[#allocation5] ss:$0 sm:$0xff] }
  0x15   :  { %96 = vmatpush.msra.mxu0 %v71_v3  ;;  %142 = vmatpush.msra.mxu1 %v71_v3 }
  0x17   :  { %97 = vmatpush.msra.mxu0 %v70_v4  ;;  %143 = vmatpush.msra.mxu1 %v70_v4 }
  0x19   :  { %98 = vmatpush.msra.mxu0 %v69_v5  ;;  %144 = vmatpush.msra.mxu1 %v69_v5 }
  0x1b   :  { %99 = vmatpush.msra.mxu0 %v68_v6  ;;  %145 = vmatpush.msra.mxu1 %v68_v6 }
  0x1d   :  { %100 = vmatpush.msra.mxu0 %v67_v7  ;;  %146 = vmatpush.msra.mxu1 %v67_v7 }
  0x1f   :  { %101 = vmatpush.msra.mxu0 %v66_v8  ;;  %147 = vmatpush.msra.mxu1 %v66_v8 }
  0x21   :  { %102 = vmatpush.msra.mxu0 %v65_v9  ;;  %148 = vmatpush.msra.mxu1 %v65_v9 }
  0x23   :  { %103 = vmatpush.msra.mxu0 %v64_v10  ;;  %149 = vmatpush.msra.mxu1 %v64_v10 }
  0x25   :  { %104 = vmatpush.msra.mxu0 %v63_v11  ;;  %150 = vmatpush.msra.mxu1 %v63_v11 }
  0x27   :  { %105 = vmatpush.msra.mxu0 %v62_v12  ;;  %151 = vmatpush.msra.mxu1 %v62_v12 }
  0x28   :  { %137 = vmatmul.msk.f32.vlgmr.msra.gmra.mxu0 %vm79_vm1, %v60_v13  ;;  %138 = vmatmul.msk.f32.vlgmr.msra.gmra.mxu1 %vm79_vm1, %v61_v14 }
  0xa5   :  { %v107_v16 = vpop.f32.mrf.mxu0  ;;  %v110_v17 = vpop.f32.mrf.mxu1 }
  0xa6   :  { %v108_v18 = vadd.f32 %v158_v15, %v107_v16  ;;  %v111_v19 = vadd.f32 %v158_v15, %v110_v17 }
  0xa8   :  { %113 = vst.msk [vmem:[#allocation8] sm:$0xff] %vm79_vm1, %v108_v18 }
  0xa9   :  { %115 = vst.msk [vmem:[#allocation8 + $0x8] sm:$0xf] %vm114_vm2, %v111_v19 }
  0xaa   :  { %128 = dma.vmem_to_hbm [thread:$0]  %s121_s2, 256, %s123_s30, [#allocation4], %s263_s22, %s263_s22, %s264_s23  }
  0xab   :  { %259 = dma.done.wait [#allocation4], 256  }
  0xac   :  { %260 = vsyncadd [#allocation4], 4294967040 }
  0xad   :  { %133 = vsyncpa [#allocation3], 1 }
  0xae   :  { %134 = vsyncpa [#allocation6], 1 }
  0xaf   :  { %135 = vsyncpa [#allocation4], 1 }

</bundles_post_ra>
